<compile_context>
chip_gen: v6e
topology: v6e:2x2x1
jax: 0.10.0
libtpu: 0.0.40
codegen_flags: <defaults>
</compile_context>

<pallas_src>
import numpy as np
import jax
import jax.numpy as jnp
from jax.experimental import pallas as pl
from jax.experimental.pallas import tpu as pltpu


# sublane packing (rows per vreg sublane group) by dtype itemsize
_SUBLANE_PACK = {1: 32, 2: 16, 4: 8, 8: 8}


def _make_preprocess_kernel(c, h, w, wp, th, out_dtype):
    """Build the per-(image, row-tile) kernel with static shapes baked in."""
    pad_w = wp - w

    def kernel(x_ref, scale_ref, bias_ref, out_ref):
        # x_ref    : (1, C, TH, W)   raw image rows (uint8 or float)
        # scale_ref: (C,)  SMEM      per-channel 1/std
        # bias_ref : (C,)  SMEM      per-channel -mean/std
        # out_ref  : (1, C, TH, Wp)  normalized + zero-padded output rows
        r = pl.program_id(0)          # row-tile index
        row_start = r * th

        def emit(mask_pad_rows):
            if mask_pad_rows:
                rows = row_start + jax.lax.broadcasted_iota(jnp.int32, (th, w), 0)
                keep = rows < h       # rows >= H are pad rows (or garbage) -> 0
            for ch in range(c):       # static unrolled loop, C is tiny (3)
                xc = x_ref[0, ch].astype(jnp.float32)       # cast in-register
                yc = xc * scale_ref[ch] + bias_ref[ch]      # scalar FMA on VPU
                if mask_pad_rows:
                    yc = jnp.where(keep, yc, 0.0)
                out_ref[0, ch, :, :w] = yc.astype(out_dtype)

        # Only the boundary tile (and the fully-padded trailing tiles) pay for
        # the iota/compare/select; interior tiles take the cheap branch.
        @pl.when(row_start + th <= h)
        def _():
            emit(False)

        @pl.when(row_start + th > h)
        def _():
            emit(True)

        if pad_w > 0:
            # column pad margin (< size_divisibility lanes), written once per tile
            out_ref[0, :, :, w:] = jnp.zeros((c, th, pad_w), out_dtype)

    return kernel


def mmdet_preprocess(images, pixel_mean, pixel_std, size_divisibility=32,
                     out_dtype=jnp.float32, row_tile=None,
                     vmem_budget_bytes=24 * 1024 * 1024):
    """Pallas port of the image-preparation hot path of MMDetDetector.forward.

    images: (N, C, H, W) uint8 or float array (all images same size; differently
            sized images must be padded individually before this call).
    Returns (N, C, Hp, Wp) `out_dtype` with Hp/Wp rounded up to size_divisibility.
    """
    n, c, h, w = (int(d) for d in images.shape)
    sd = max(int(size_divisibility), 1)
    hp = -(-h // sd) * sd
    wp = -(-w // sd) * sd

    # fold (x - mean) / std  ->  x * scale + bias, one scalar pair per channel
    mean = np.asarray(pixel_mean, np.float32).reshape(c)
    std = np.asarray(pixel_std, np.float32).reshape(c)
    scale = jnp.asarray((1.0 / std).astype(np.float32))    # (C,)
    bias = jnp.asarray((-mean / std).astype(np.float32))   # (C,)

    in_it = np.dtype(images.dtype).itemsize
    out_it = np.dtype(out_dtype).itemsize

    # Row tile: largest th such that the double-buffered (C, th, *) input +
    # output blocks stay under the VMEM budget, rounded to the sublane packing
    # of the narrowest dtype involved (avoids relayout copies on the cast path).
    bytes_per_row = c * (w * in_it + wp * out_it)
    if row_tile is None:
        th = max(1, vmem_budget_bytes // (2 * bytes_per_row))
    else:
        th = max(1, int(row_tile))
    th = min(th, hp, 1024)
    pack = max(_SUBLANE_PACK.get(in_it, 8), _SUBLANE_PACK.get(out_it, 8))
    if th >= pack:
        th = (th // pack) * pack
    elif th >= 8:
        th = (th // 8) * 8
    grid_rows = pl.cdiv(hp, th)

    # clamp the input row-block index so input DMAs never start past H
    # (pad rows / garbage rows are masked to zero in-kernel)
    max_in_block = max((h - 1) // th, 0)

    kernel = _make_preprocess_kernel(c, h, w, wp, th, out_dtype)

    cost = pl.CostEstimate(
        flops=2 * n * c * h * w, transcendentals=0,
        bytes_accessed=n * c * h * w * in_it + n * c * hp * wp * out_it)

    out = pl.pallas_call(
        kernel,
        out_shape=jax.ShapeDtypeStruct((n, c, hp, wp), out_dtype),
        # row-tile axis first: the axis split across TensorCores (v7x megacore)
        # is the large/even one, even for N=1 detection batches
        grid=(grid_rows, n),
        in_specs=[
            pl.BlockSpec((1, c, th, w),
                         lambda r, b: (b, 0, jnp.minimum(r, max_in_block), 0)),
            pl.BlockSpec(memory_space=pltpu.MemorySpace.SMEM),   # scale (C,)
            pl.BlockSpec(memory_space=pltpu.MemorySpace.SMEM),   # bias  (C,)
        ],
        out_specs=pl.BlockSpec((1, c, th, wp), lambda r, b: (b, 0, r, 0)),
        compiler_params=pltpu.CompilerParams(
            dimension_semantics=("parallel", "parallel"),
            vmem_limit_bytes=32 * 1024 * 1024),
        cost_estimate=cost,
    )(images, scale, bias)

    return out


class MMDetDetectorPallas:
    """Mirror of MMDetDetector.forward preprocessing + meta construction."""

    def __init__(self, *, size_divisibility=32, pixel_mean, pixel_std,
                 out_dtype=jnp.float32):
        self.size_divisibility = size_divisibility
        self.pixel_mean = np.asarray(pixel_mean, np.float32)
        self.pixel_std = np.asarray(pixel_std, np.float32)
        self.out_dtype = out_dtype
        assert self.pixel_mean.shape == self.pixel_std.shape, (
            f"{self.pixel_mean} and {self.pixel_std} have different shapes!")

    def forward(self, batched_inputs):
        imgs = jnp.stack([x["image"] for x in batched_inputs], axis=0)  # (N,C,H,W)
        images = mmdet_preprocess(
            imgs, self.pixel_mean, self.pixel_std, self.size_divisibility,
            out_dtype=self.out_dtype)

        # metadata construction (pure Python glue, same logic as the reference)
        rescale = {"height" in x for x in batched_inputs}
        if len(rescale) != 1:
            raise ValueError("Some inputs have original height/width, but some don't!")
        rescale = list(rescale)[0]
        metas, output_shapes = [], []
        padh, padw = images.shape[-2:]
        for inp in batched_inputs:
            c, h, w = inp["image"].shape
            meta = {"img_shape": (h, w, c), "ori_shape": (h, w, c)}
            if rescale:
                meta["scale_factor"] = np.array(
                    [w / inp["width"], h / inp["height"]] * 2, dtype="float32")
                meta["ori_shape"] = (inp["height"], inp["width"], c)
                output_shapes.append((inp["height"], inp["width"]))
            else:
                meta["scale_factor"] = 1.0
                output_shapes.append((h, w))
            meta["flip"] = False
            meta["pad_shape"] = (padh, padw, c)
            metas.append(meta)

        # TODO(synk): self.detector.simple_test / forward_train is an external
        # mmdet model (arbitrary backbone+head); no Pallas equivalent here.
        # Likewise _convert_mmdet_result / _parse_losses operate on its outputs.
        return {"images": images, "metas": metas, "output_shapes": output_shapes}


if __name__ == "__main__":
    key = jax.random.PRNGKey(0)
    k1, k2 = jax.random.split(key)

    pixel_mean = (103.530, 116.280, 123.675)
    pixel_std = (57.375, 57.120, 58.395)
    C = 3
    mean4 = jnp.asarray(pixel_mean, jnp.float32).reshape(1, C, 1, 1)
    std4 = jnp.asarray(pixel_std, jnp.float32).reshape(1, C, 1, 1)

    # --- check 1: uint8 images (typical detection input), non-divisible dims,
    #     through the wrapper class ---
    N, H, W = 2, 20, 24
    imgs_u8 = jax.random.randint(k1, (N, C, H, W), 0, 256, jnp.int32).astype(jnp.uint8)

    model = MMDetDetectorPallas(
        size_divisibility=32, pixel_mean=pixel_mean, pixel_std=pixel_std)
    batched_inputs = [{"image": imgs_u8[i]} for i in range(N)]
    out = model.forward(batched_inputs)
    images = jax.block_until_ready(out["images"])

    hp, wp = images.shape[-2:]
    norm = (imgs_u8.astype(jnp.float32) - mean4) / std4
    ref = jnp.zeros((N, C, hp, wp), jnp.float32).at[:, :, :H, :W].set(norm)
    np.testing.assert_allclose(np.asarray(images), np.asarray(ref),
                               rtol=1e-5, atol=1e-4)

    # --- check 2: float32 images, small row_tile to exercise the multi-tile
    #     grid, the clamped input block, the masked boundary tile and the
    #     fully-padded trailing tiles ---
    N2, H2, W2 = 1, 40, 100
    imgs_f32 = jax.random.uniform(k2, (N2, C, H2, W2), jnp.float32, 0.0, 255.0)
    out2 = jax.block_until_ready(
        mmdet_preprocess(imgs_f32, pixel_mean, pixel_std,
                         size_divisibility=32, row_tile=16))
    hp2, wp2 = out2.shape[-2:]
    norm2 = (imgs_f32 - mean4) / std4
    ref2 = jnp.zeros((N2, C, hp2, wp2), jnp.float32).at[:, :, :H2, :W2].set(norm2)
    np.testing.assert_allclose(np.asarray(out2), np.asarray(ref2),
                               rtol=1e-5, atol=1e-4)

    # --- check 3: bf16 output path (halves the dominant output-write traffic
    #     when the downstream detector runs in bf16) ---
    out3 = jax.block_until_ready(
        mmdet_preprocess(imgs_u8, pixel_mean, pixel_std, size_divisibility=32,
                         out_dtype=jnp.bfloat16))
    np.testing.assert_allclose(np.asarray(out3.astype(jnp.float32)),
                               np.asarray(ref), rtol=2e-2, atol=3e-2)

    print("KERNEL_OK")
</pallas_src>

<mosaic_0001>
module attributes {stable_mosaic.version = 11 : i64} {
  func.func @kernel(%arg0: i32, %arg1: i32, %arg2: memref<1x3x32x24xi8, #tpu.memory_space<vmem>>, %arg3: memref<3xf32, #tpu.memory_space<smem>>, %arg4: memref<3xf32, #tpu.memory_space<smem>>, %arg5: memref<1x3x32x32xf32, #tpu.memory_space<vmem>>) attributes {dimension_semantics = [#tpu.dimension_semantics<parallel>, #tpu.dimension_semantics<parallel>], iteration_bounds = array<i64: 1, 2>, scalar_prefetch = 0 : i64, scratch_operands = 0 : i64, tpu.core_type = #tpu.core_type<tc>, window_params = [{transform_indices = @transform_0, window_bounds = array<i64: 1, 3, 32, 24>}, {transform_indices = @transform_1, window_bounds = array<i64: 3>}, {transform_indices = @transform_2, window_bounds = array<i64: 3>}, {transform_indices = @transform_3, window_bounds = array<i64: 1, 3, 32, 32>}]} {
    %c32_i32 = arith.constant 32 : i32
    %0 = arith.muli %arg0, %c32_i32 : i32
    %c32_i32_0 = arith.constant 32 : i32
    %1 = arith.addi %0, %c32_i32_0 : i32
    %c20_i32 = arith.constant 20 : i32
    %2 = arith.cmpi sle, %1, %c20_i32 : i32
    %3 = arith.extui %2 : i1 to i32
    %c0_i32 = arith.constant 0 : i32
    %4 = arith.cmpi ne, %3, %c0_i32 : i32
    scf.if %4 {
      %c0_6 = arith.constant 0 : index
      %c0_7 = arith.constant 0 : index
      %c0_8 = arith.constant 0 : index
      %c0_9 = arith.constant 0 : index
      %13 = vector.load %arg2[%c0_6, %c0_7, %c0_8, %c0_9] : memref<1x3x32x24xi8, #tpu.memory_space<vmem>>, vector<1x1x32x24xi8>
      %14 = vector.shape_cast %13 : vector<1x1x32x24xi8> to vector<32x24xi8>
      %15 = arith.uitofp %14 : vector<32x24xi8> to vector<32x24xf32>
      %c0_10 = arith.constant 0 : index
      %16 = memref.load %arg3[%c0_10] : memref<3xf32, #tpu.memory_space<smem>>
      %17 = vector.broadcast %16 : f32 to vector<32x24xf32>
      %18 = arith.mulf %15, %17 : vector<32x24xf32>
      %c0_11 = arith.constant 0 : index
      %19 = memref.load %arg4[%c0_11] : memref<3xf32, #tpu.memory_space<smem>>
      %20 = vector.broadcast %19 : f32 to vector<32x24xf32>
      %21 = arith.addf %18, %20 : vector<32x24xf32>
      %c0_12 = arith.constant 0 : index
      %c0_13 = arith.constant 0 : index
      %c0_14 = arith.constant 0 : index
      %c0_15 = arith.constant 0 : index
      %22 = vector.load %arg5[%c0_12, %c0_13, %c0_14, %c0_15] : memref<1x3x32x32xf32, #tpu.memory_space<vmem>>, vector<1x1x32x24xf32>
      %23 = vector.shape_cast %22 : vector<1x1x32x24xf32> to vector<32x24xf32>
      %24 = vector.shape_cast %21 : vector<32x24xf32> to vector<1x1x32x24xf32>
      tpu.vector_store %arg5[%c0_12, %c0_13, %c0_14, %c0_15], %24 {strides = array<i32>} : memref<1x3x32x32xf32, #tpu.memory_space<vmem>>, vector<1x1x32x24xf32>,
      %c0_16 = arith.constant 0 : index
      %c1 = arith.constant 1 : index
      %c0_17 = arith.constant 0 : index
      %c0_18 = arith.constant 0 : index
      %25 = vector.load %arg2[%c0_16, %c1, %c0_17, %c0_18] : memref<1x3x32x24xi8, #tpu.memory_space<vmem>>, vector<1x1x32x24xi8>
      %26 = vector.shape_cast %25 : vector<1x1x32x24xi8> to vector<32x24xi8>
      %27 = arith.uitofp %26 : vector<32x24xi8> to vector<32x24xf32>
      %c1_19 = arith.constant 1 : index
      %28 = memref.load %arg3[%c1_19] : memref<3xf32, #tpu.memory_space<smem>>
      %29 = vector.broadcast %28 : f32 to vector<32x24xf32>
      %30 = arith.mulf %27, %29 : vector<32x24xf32>
      %c1_20 = arith.constant 1 : index
      %31 = memref.load %arg4[%c1_20] : memref<3xf32, #tpu.memory_space<smem>>
      %32 = vector.broadcast %31 : f32 to vector<32x24xf32>
      %33 = arith.addf %30, %32 : vector<32x24xf32>
      %c0_21 = arith.constant 0 : index
      %c1_22 = arith.constant 1 : index
      %c0_23 = arith.constant 0 : index
      %c0_24 = arith.constant 0 : index
      %34 = vector.load %arg5[%c0_21, %c1_22, %c0_23, %c0_24] : memref<1x3x32x32xf32, #tpu.memory_space<vmem>>, vector<1x1x32x24xf32>
      %35 = vector.shape_cast %34 : vector<1x1x32x24xf32> to vector<32x24xf32>
      %36 = vector.shape_cast %33 : vector<32x24xf32> to vector<1x1x32x24xf32>
      tpu.vector_store %arg5[%c0_21, %c1_22, %c0_23, %c0_24], %36 {strides = array<i32>} : memref<1x3x32x32xf32, #tpu.memory_space<vmem>>, vector<1x1x32x24xf32>,
      %c0_25 = arith.constant 0 : index
      %c2 = arith.constant 2 : index
      %c0_26 = arith.constant 0 : index
      %c0_27 = arith.constant 0 : index
      %37 = vector.load %arg2[%c0_25, %c2, %c0_26, %c0_27] : memref<1x3x32x24xi8, #tpu.memory_space<vmem>>, vector<1x1x32x24xi8>
      %38 = vector.shape_cast %37 : vector<1x1x32x24xi8> to vector<32x24xi8>
      %39 = arith.uitofp %38 : vector<32x24xi8> to vector<32x24xf32>
      %c2_28 = arith.constant 2 : index
      %40 = memref.load %arg3[%c2_28] : memref<3xf32, #tpu.memory_space<smem>>
      %41 = vector.broadcast %40 : f32 to vector<32x24xf32>
      %42 = arith.mulf %39, %41 : vector<32x24xf32>
      %c2_29 = arith.constant 2 : index
      %43 = memref.load %arg4[%c2_29] : memref<3xf32, #tpu.memory_space<smem>>
      %44 = vector.broadcast %43 : f32 to vector<32x24xf32>
      %45 = arith.addf %42, %44 : vector<32x24xf32>
      %c0_30 = arith.constant 0 : index
      %c2_31 = arith.constant 2 : index
      %c0_32 = arith.constant 0 : index
      %c0_33 = arith.constant 0 : index
      %46 = vector.load %arg5[%c0_30, %c2_31, %c0_32, %c0_33] : memref<1x3x32x32xf32, #tpu.memory_space<vmem>>, vector<1x1x32x24xf32>
      %47 = vector.shape_cast %46 : vector<1x1x32x24xf32> to vector<32x24xf32>
      %48 = vector.shape_cast %45 : vector<32x24xf32> to vector<1x1x32x24xf32>
      tpu.vector_store %arg5[%c0_30, %c2_31, %c0_32, %c0_33], %48 {strides = array<i32>} : memref<1x3x32x32xf32, #tpu.memory_space<vmem>>, vector<1x1x32x24xf32>,
    } else {
    }
    %c32_i32_1 = arith.constant 32 : i32
    %5 = arith.addi %0, %c32_i32_1 : i32
    %c20_i32_2 = arith.constant 20 : i32
    %6 = arith.cmpi sgt, %5, %c20_i32_2 : i32
    %7 = arith.extui %6 : i1 to i32
    %c0_i32_3 = arith.constant 0 : i32
    %8 = arith.cmpi ne, %7, %c0_i32_3 : i32
    scf.if %8 {
      %13 = tpu.iota {dimensions = array<i32: 0>} : vector<32x24xi32>
      %14 = vector.broadcast %0 : i32 to vector<32x24xi32>
      %15 = arith.addi %14, %13 : vector<32x24xi32>
      %c20_i32_6 = arith.constant 20 : i32
      %16 = vector.broadcast %c20_i32_6 : i32 to vector<32x24xi32>
      %17 = arith.cmpi slt, %15, %16 : vector<32x24xi32>
      %c0_7 = arith.constant 0 : index
      %c0_8 = arith.constant 0 : index
      %c0_9 = arith.constant 0 : index
      %c0_10 = arith.constant 0 : index
      %18 = vector.load %arg2[%c0_7, %c0_8, %c0_9, %c0_10] : memref<1x3x32x24xi8, #tpu.memory_space<vmem>>, vector<1x1x32x24xi8>
      %19 = vector.shape_cast %18 : vector<1x1x32x24xi8> to vector<32x24xi8>
      %20 = arith.uitofp %19 : vector<32x24xi8> to vector<32x24xf32>
      %c0_11 = arith.constant 0 : index
      %21 = memref.load %arg3[%c0_11] : memref<3xf32, #tpu.memory_space<smem>>
      %22 = vector.broadcast %21 : f32 to vector<32x24xf32>
      %23 = arith.mulf %20, %22 : vector<32x24xf32>
      %c0_12 = arith.constant 0 : index
      %24 = memref.load %arg4[%c0_12] : memref<3xf32, #tpu.memory_space<smem>>
      %25 = vector.broadcast %24 : f32 to vector<32x24xf32>
      %26 = arith.addf %23, %25 : vector<32x24xf32>
      %cst_13 = arith.constant 0.000000e+00 : f32
      %27 = vector.broadcast %cst_13 : f32 to vector<32x24xf32>
      %28 = arith.select %17, %26, %27 : vector<32x24xi1>, vector<32x24xf32>
      %c0_14 = arith.constant 0 : index
      %c0_15 = arith.constant 0 : index
      %c0_16 = arith.constant 0 : index
      %c0_17 = arith.constant 0 : index
      %29 = vector.load %arg5[%c0_14, %c0_15, %c0_16, %c0_17] : memref<1x3x32x32xf32, #tpu.memory_space<vmem>>, vector<1x1x32x24xf32>
      %30 = vector.shape_cast %29 : vector<1x1x32x24xf32> to vector<32x24xf32>
      %31 = vector.shape_cast %28 : vector<32x24xf32> to vector<1x1x32x24xf32>
      tpu.vector_store %arg5[%c0_14, %c0_15, %c0_16, %c0_17], %31 {strides = array<i32>} : memref<1x3x32x32xf32, #tpu.memory_space<vmem>>, vector<1x1x32x24xf32>,
      %c0_18 = arith.constant 0 : index
      %c1 = arith.constant 1 : index
      %c0_19 = arith.constant 0 : index
      %c0_20 = arith.constant 0 : index
      %32 = vector.load %arg2[%c0_18, %c1, %c0_19, %c0_20] : memref<1x3x32x24xi8, #tpu.memory_space<vmem>>, vector<1x1x32x24xi8>
      %33 = vector.shape_cast %32 : vector<1x1x32x24xi8> to vector<32x24xi8>
      %34 = arith.uitofp %33 : vector<32x24xi8> to vector<32x24xf32>
      %c1_21 = arith.constant 1 : index
      %35 = memref.load %arg3[%c1_21] : memref<3xf32, #tpu.memory_space<smem>>
      %36 = vector.broadcast %35 : f32 to vector<32x24xf32>
      %37 = arith.mulf %34, %36 : vector<32x24xf32>
      %c1_22 = arith.constant 1 : index
      %38 = memref.load %arg4[%c1_22] : memref<3xf32, #tpu.memory_space<smem>>
      %39 = vector.broadcast %38 : f32 to vector<32x24xf32>
      %40 = arith.addf %37, %39 : vector<32x24xf32>
      %cst_23 = arith.constant 0.000000e+00 : f32
      %41 = vector.broadcast %cst_23 : f32 to vector<32x24xf32>
      %42 = arith.select %17, %40, %41 : vector<32x24xi1>, vector<32x24xf32>
      %c0_24 = arith.constant 0 : index
      %c1_25 = arith.constant 1 : index
      %c0_26 = arith.constant 0 : index
      %c0_27 = arith.constant 0 : index
      %43 = vector.load %arg5[%c0_24, %c1_25, %c0_26, %c0_27] : memref<1x3x32x32xf32, #tpu.memory_space<vmem>>, vector<1x1x32x24xf32>
      %44 = vector.shape_cast %43 : vector<1x1x32x24xf32> to vector<32x24xf32>
      %45 = vector.shape_cast %42 : vector<32x24xf32> to vector<1x1x32x24xf32>
      tpu.vector_store %arg5[%c0_24, %c1_25, %c0_26, %c0_27], %45 {strides = array<i32>} : memref<1x3x32x32xf32, #tpu.memory_space<vmem>>, vector<1x1x32x24xf32>,
      %c0_28 = arith.constant 0 : index
      %c2 = arith.constant 2 : index
      %c0_29 = arith.constant 0 : index
      %c0_30 = arith.constant 0 : index
      %46 = vector.load %arg2[%c0_28, %c2, %c0_29, %c0_30] : memref<1x3x32x24xi8, #tpu.memory_space<vmem>>, vector<1x1x32x24xi8>
      %47 = vector.shape_cast %46 : vector<1x1x32x24xi8> to vector<32x24xi8>
      %48 = arith.uitofp %47 : vector<32x24xi8> to vector<32x24xf32>
      %c2_31 = arith.constant 2 : index
      %49 = memref.load %arg3[%c2_31] : memref<3xf32, #tpu.memory_space<smem>>
      %50 = vector.broadcast %49 : f32 to vector<32x24xf32>
      %51 = arith.mulf %48, %50 : vector<32x24xf32>
      %c2_32 = arith.constant 2 : index
      %52 = memref.load %arg4[%c2_32] : memref<3xf32, #tpu.memory_space<smem>>
      %53 = vector.broadcast %52 : f32 to vector<32x24xf32>
      %54 = arith.addf %51, %53 : vector<32x24xf32>
      %cst_33 = arith.constant 0.000000e+00 : f32
      %55 = vector.broadcast %cst_33 : f32 to vector<32x24xf32>
      %56 = arith.select %17, %54, %55 : vector<32x24xi1>, vector<32x24xf32>
      %c0_34 = arith.constant 0 : index
      %c2_35 = arith.constant 2 : index
      %c0_36 = arith.constant 0 : index
      %c0_37 = arith.constant 0 : index
      %57 = vector.load %arg5[%c0_34, %c2_35, %c0_36, %c0_37] : memref<1x3x32x32xf32, #tpu.memory_space<vmem>>, vector<1x1x32x24xf32>
      %58 = vector.shape_cast %57 : vector<1x1x32x24xf32> to vector<32x24xf32>
      %59 = vector.shape_cast %56 : vector<32x24xf32> to vector<1x1x32x24xf32>
      tpu.vector_store %arg5[%c0_34, %c2_35, %c0_36, %c0_37], %59 {strides = array<i32>} : memref<1x3x32x32xf32, #tpu.memory_space<vmem>>, vector<1x1x32x24xf32>,
    } else {
    }
    %cst = arith.constant 0.000000e+00 : f32
    %9 = vector.broadcast %cst : f32 to vector<3x32x8xf32>
    %c0 = arith.constant 0 : index
    %c0_4 = arith.constant 0 : index
    %c0_5 = arith.constant 0 : index
    %c24 = arith.constant 24 : index
    %10 = vector.load %arg5[%c0, %c0_4, %c0_5, %c24] : memref<1x3x32x32xf32, #tpu.memory_space<vmem>>, vector<1x3x32x8xf32>
    %11 = vector.shape_cast %10 : vector<1x3x32x8xf32> to vector<3x32x8xf32>
    %12 = vector.shape_cast %9 : vector<3x32x8xf32> to vector<1x3x32x8xf32>
    tpu.vector_store %arg5[%c0, %c0_4, %c0_5, %c24], %12 {strides = array<i32>} : memref<1x3x32x32xf32, #tpu.memory_space<vmem>>, vector<1x3x32x8xf32>,
    return
  }
  func.func @transform_0(%arg0: i32, %arg1: i32) -> (i32, i32, i32, i32) {
    %c0_i32 = arith.constant 0 : i32
    %0 = arith.minsi %arg0, %c0_i32 : i32
    %c0_i32_0 = arith.constant 0 : i32
    %c0_i32_1 = arith.constant 0 : i32
    %c0_i32_2 = arith.constant 0 : i32
    return %arg1, %c0_i32_0, %0, %c0_i32_1 : i32, i32, i32, i32
  }
  func.func @transform_1(%arg0: i32, %arg1: i32) -> i32 {
    %c0_i32 = arith.constant 0 : i32
    %c0_i32_0 = arith.constant 0 : i32
    return %c0_i32 : i32
  }
  func.func @transform_2(%arg0: i32, %arg1: i32) -> i32 {
    %c0_i32 = arith.constant 0 : i32
    %c0_i32_0 = arith.constant 0 : i32
    return %c0_i32 : i32
  }
  func.func @transform_3(%arg0: i32, %arg1: i32) -> (i32, i32, i32, i32) {
    %c0_i32 = arith.constant 0 : i32
    %c0_i32_0 = arith.constant 0 : i32
    %c0_i32_1 = arith.constant 0 : i32
    return %arg1, %c0_i32, %arg0, %c0_i32_0 : i32, i32, i32, i32
  }
}

</mosaic_0001>

<bundles_post_ra>
// kernel: tpu_custom_call.1
= control target key start
LH: loop header
LB: loop body
LE: loop exit
PB: predicated region body
PF: predicated region fallthrough
CT: control target
= control target key end

     0   :  { %s1232_s0 = inlined_call_operand.hbm [shape: u8[2,3,20,24], index: 0, kind: input, shape index: {}]   ;;  %s1233_s1 = inlined_call_operand.vmem [shape: f32[3], index: 1, kind: input, shape index: {}]   ;;  %s1234_s2 = inlined_call_operand.vmem [shape: f32[3], index: 2, kind: input, shape index: {}]   ;;  %s1235_s3 = inlined_call_operand.hbm [shape: f32[2,3,32,32], index: 3, kind: output, shape index: {}]  }
   0x1   :  { %1241 = sst [smem:[#allocation16_spill]] %s1233_s1 }
   0x2   :  { %1242 = sst [smem:[#allocation17_spill]] %s1234_s2 }
   0x3   :  { %8 = vsyncpa [#allocation3], 0 }
   0x4   :  { %10 = vsyncpa [#allocation3 + $0x1], 0 }
   0x5   :  { %11 = vsyncpa [#allocation5], 0 }
   0x6   :  { %12 = vsyncpa [#allocation8], 0 }
   0x7   :  { %13 = vsyncpa [#allocation4], 0 }
   0x8   :  { %15 = vsyncpa [#allocation4 + $0x1], 0  ;;  %s964_s12 = smov 0   ;;  %s966_s13 = smov 0  }
   0x9   :  { %s968_s14 = smov 0   ;;  %s970_s15 = smov 0  }
   0xa   :  { %s972_s16 = smov 0   ;;  %s974_s17 = smov 0  }
   0xb LB: > { %s652_s18 = sadd.s32 4294967295, %s930_s17   ;;  %s653_s19 = sadd.s32 4294967294, %s930_s17   ;;  %s930_s17 = sphi %s974_s17, %s21_s17   ;;  %s926_s16 = sphi %s972_s16, %s1262_s16   ;;  %s922_s15 = sphi %s970_s15, %s1261_s15   ;;  %s918_s14 = sphi %s968_s14, %s1260_s14   ;;  %s914_s13 = sphi %s966_s13, %s1259_s13   ;;  %s910_s12 = sphi %s964_s12, %s1258_s12  }
   0xc   : > { %s30_s20 = sadd.s32 1, %s926_s16  ;;  %s46_s21 = sadd.s32 1, %s918_s14 }
   0xd   : > { %p31_p0 = scmp.ge.s32.totalorder %s30_s20, 2  ;;  %p53_p1 = scmp.ne.s32.totalorder %s918_s14, %s914_s13 }
   0xe   : > { %p54_p2 = scmp.eq.s32.totalorder %s930_s17, 0  ;;  %p59_p3 = scmp.ne.s32.totalorder %s914_s13, %s910_s12 }
   0xf   : > { %s1264_s20 = smov (%p31_p0, %s30_s20), 0  ;;  %p1009_p5 = scmp.eq.s32.totalorder %s652_s18, 0 }
  0x10   : > { %p1005_p4 = por %p54_p2, %p53_p1  ;;  %s41_s24 = ssub.s32 %s926_s16, %s1264_s20 }
  0x11   : > { %s1244_s23 = scalar_select %p1009_p5, 1, 0 }
  0x12   : > { %s1243_s22 = scalar_select %p1005_p4, 1, 0 }
  0x13   : > { %p127_p6 = scmp.eq.s32.totalorder %s652_s18, 1  ;;  %p44_p7 = scmp.eq.s32.totalorder %s41_s24, 0 }
  0x14   : > { %p1017_p8 = por %p1009_p5, %p59_p3  ;;  %p133_p10 = scmp.eq.s32.totalorder %s653_s19, 1 }
  0x15   : > { %p1021_p9 = por %p127_p6, %p53_p1  ;;  %p654_p12 = scmp.ge.s32.totalorder %s930_s17, 1 }
  0x16   : > { %s1245_s25 = scalar_select %p1017_p8, 1, 0 }
  0x17   : > { %s1246_s26 = scalar_select %p1021_p9, 1, 0 }
  0x18   : > { %s1026_s27 = scalar_select %p44_p7, %s918_s14, %s46_s21  }
  0x19   : > { %p1028_p11 = por %p133_p10, %p59_p3  ;;  %p140_p13 = scmp.lt.s32.totalorder %s930_s17, 3 }
  0x1a   : > { %s1249_s1 = sld [smem:[#allocation16_spill]] }
  0x1b   : > { %s1247_s28 = scalar_select %p1028_p11, 1, 0 }
  0x1c   : > { %p1034_p0 = pnand %p654_p12, %p140_p13  ;;  %s1250_s2 = sld [smem:[#allocation17_spill]] }
  0x1e   : > { %s1248_s29 = scalar_select %p1034_p0, 1, 0 }
  0x1f   : > { %p737_p1 = pneg %p1034_p0 }
  0x20   : > { %s153_s5 = sshll.u32 %s1249_s1, 4  ;;  %s154_s5 = int_to_ptr.vmem [resolvable:$true] %s153_s5 }
  0x21   : > { %p1048_p2 = pnand %p737_p1, %p1009_p5  ;;  %s812_s10 = scalar_lea.vmem %s154_s5, 16 }
  0x22   : > { %s164_s8 = sshll.u32 %s1250_s2, 4  ;;  %p813_p3 = scmp.ne.s32.totalorder %s154_s5, %s812_s10  ;;  %s165_s8 = int_to_ptr.vmem [resolvable:$true] %s164_s8 }
  0x23   : > { %p814_p6 = pneg %p1048_p2  ;;  %p820_p12 = scmp.lt.s32.totalorder %s154_s5, %s154_s5 }
  0x24   : > { %p821_p13 = scmp.lt.s32.totalorder %s812_s10, %s812_s10 }
  0x25   : > { %p815_p7 = pnand %p814_p6, %p813_p3 }
  0x26   : > { %p822_p11 = por %p821_p13, %p820_p12 }
  0x27   : > { %p816_p10 = pneg %p815_p7 }
  0x29   : > { %p823_p9 = pnand %p822_p11, %p816_p10 }
  0x2b   : > { %826 = shalt.err (!%p823_p9)
}
  0x2c   : > { %s932_s11 = smov [#allocation6]   ;;  %s827_s18 = scalar_lea.vmem %s165_s8, 16 }
  0x2d   : > { %740 = dma.vmem_to_smem (!%p1048_p2), %s154_s5, 16, %s932_s11, [#allocation5]  }
  0x2e   : > { %p828_p1 = scmp.ne.s32.totalorder %s165_s8, %s827_s18  ;;  %p835_p0 = scmp.lt.s32.totalorder %s165_s8, %s165_s8 }
  0x2f   : > { %p836_p4 = scmp.lt.s32.totalorder %s827_s18, %s827_s18 }
  0x30   : > { %p830_p5 = pnand %p828_p1, %p814_p6 }
  0x31   : > { %p837_p3 = por %p836_p4, %p835_p0 }
  0x32   : > { %p831_p8 = pneg %p830_p5 }
  0x34   : > { %p838_p7 = pnand %p837_p3, %p831_p8 }
  0x36   : > { %841 = shalt.err (!%p838_p7)
}
  0x37   : > { %s933_s19 = smov [#allocation7]   ;;  %p657_p9 = scmp.ge.s32.totalorder %s930_s17, 2 }
  0x38   : > { %743 = dma.vmem_to_smem (!%p1048_p2), %s165_s8, 16, %s933_s19, [#allocation8]  }
  0x39   : > { %171 = sbr.rel (%p657_p9) target bundleno = 81 (0x51), region = 24  ;;  %p1252_p11 = scmp.ne.s32.totalorder (!%p657_p9), %s1243_s22, 0 }
  0x3e   : > { %174 = sbr.rel (!%p1252_p11) target bundleno = 81 (0x51), region = 28 }
  0x43   : > { %s175_s21 = sand.u32 1, %s918_s14  }
  0x44   : > { %s721_s24 = smul.u32 24, %s175_s21  ;;  %s176_s30 = scalar_lea.sflag [#allocation3], %s175_s21 }
  0x46   : > { %s179_s4 = scalar_lea.vmem [#allocation2], %s721_s24 }
  0x47   : > { %187 = vsyncadd %s176_s30, 96  ;;  %s722_s5 = smul.u32 288, %s926_s16  ;;  %s199_s6 = sld [smem:[#allocation0]]  }
  0x48   : > { %s207_s7 = sshll.u32 %s179_s4, 4  ;;  %s934_s11 = smov 96   ;;  %s208_s7 = int_to_ptr.vmem [resolvable:$true] %s207_s7 }
  0x49   : > { %s192_s10 = scalar_lea.hbm %s1232_s0, %s722_s5  ;;  %214 = sst [smem:[#allocation11]] %s934_s11 }
  0x4a   : > { %s935_s18 = smov 128   ;;  %s936_s22 = smov 3  }
  0x4b   : > { %216 = sst [smem:[#allocation11 + $0x1]] %s935_s18  ;;  %s937_s1 = smov 32  }
  0x4c   : > { %218 = sst [smem:[#allocation11 + $0x2]] %s936_s22  ;;  %s938_s24 = smov 2  }
  0x4d   : > { %s659_s19 = sshll.u32 %s199_s6, 26  ;;  %220 = sst [smem:[#allocation11 + $0x3]] %s937_s1 }
  0x4e   : > { %s660_s21 = sadd.s32 134217728, %s659_s19  ;;  %222 = sst [smem:[#allocation11 + $0x4]] %s937_s1 }
  0x4f   : > { %224 = sst [smem:[#allocation11 + $0x5]] %s938_s24  ;;  %s939_s2 = smov 131072  }
  0x50   : > { %226 = dma.general %s192_s10, 288, %s208_s7, %s176_s30, %s939_s2, [#allocation11], %s660_s21, 0  }
  0x51 PF: > { %p1253_p4 = scmp.ne.s32.totalorder %s1248_s29, 0 }
  0x52   : > { %s1071_s4 = sand.u32 (!%p1253_p4), 1, %s914_s13   ;;  %p1254_p5 = scmp.ne.s32.totalorder (!%p1253_p4), %s1245_s25, 0 }
  0x53   : > { %232 = sbr.rel (%p1253_p4) target bundleno = 134 (0x86), region = 32  ;;  %s235_s6 = scalar_lea.sflag (!%p1253_p4), [#allocation3], %s1071_s4 }
  0x54   : > { %s723_s5 = smul.u32 (!%p1253_p4), 24, %s1071_s4 }
  0x56   : > { %s1075_s9 = scalar_lea.vmem (!%p1253_p4), [#allocation2], %s723_s5 }
  0x58   : > { %893 = dma.done.wait (%p1254_p5), %s235_s6, 384  }
  0x59   : > { %895 = vsyncadd (%p1254_p5), %s235_s6, 4294966912  ;;  %p1255_p8 = scmp.ne.s32.totalorder %s1244_s23, 0 }
  0x5b   : > { %897 = dma.done.wait (%p1255_p8), [#allocation5], 16  }
  0x5c   : > { %899 = vsyncadd (%p1255_p8), [#allocation5], 4294967280 }
  0x5d   : > { %901 = dma.done.wait (%p1255_p8), [#allocation8], 16  }
  0x5e   : > { %903 = vsyncadd (%p1255_p8), [#allocation8], 4294967280 }
  0x5f   : > { %251 = sfence }
  0x60   : > { %s724_s1 = smul.u32 96, %s1071_s4  ;;  %v708_v0 = vld [vmem:[%s1075_s9] ss:$8 sps:$4 sm:$0xff]   ;;  %s1091_s2 = sld [smem:[#allocation6]]  ;;  %vm433_vm0 = vcmask 195584   ;;  %v387_v1 = vlaneseq  ;;  %v940_v13 = vmov 0.0  }
  0x61   : > { %v709_v2 = vunpack.c.0.s8 %v708_v0  ;;  %s1093_s25 = sld [smem:[#allocation7]]  ;;  %v710_v3 = vunpack.c.1.s8 %v708_v0  ;;  %v403_v4 = vld [vmem:[%s1075_s9 + $0x4] ss:$8 sps:$2 sm:$0xf]   ;;  %v713_v5 = vunpack.c.2.s8 %v708_v0  ;;  %v714_v8 = vunpack.c.3.s8 %v708_v0  ;;  %v720_v10 = vld [vmem:[%s1075_s9 + $0x10] sm:$0xf]  }
  0x62   : > { %v388_v6 = vshrl.u32 %v387_v1, 7  ;;  %v407_v7 = vunpack.c.0.s8 %v403_v4  ;;  %s1096_s23 = sld [smem:[#allocation6 + $0x1]]  ;;  %v445_v9 = vunpack.c.1.s8 %v403_v4  ;;  %s1099_s29 = scalar_lea.vmem [#allocation9], %s724_s1  ;;  %v717_v15 = vunpack.c.0.s8 %v720_v10  ;;  %v696_v39 = vld [vmem:[%s1075_s9 + $0x14] sm:$0x3] }
  0x63   : > { %v409_v11 = vand.u32 255, %v709_v2  ;;  %v410_v12 = vand.u32 255, %v710_v3  ;;  %437 = vst.msk [vmem:[%s1099_s29 + $0x18] sm:$0xff] %vm433_vm0, %v940_v13  ;;  %693 = vst.msk [vmem:[%s1099_s29 + $0x38] sm:$0xff] %vm433_vm0, %v940_v13  ;;  %v447_v14 = vand.u32 255, %v713_v5  ;;  %s689_s30 = sld [smem:[#allocation7 + $0x1]]  ;;  %v718_v34 = vunpack.c.1.s8 %v720_v10 }
  0x64   : > { %703 = vst.msk [vmem:[%s1099_s29 + $0x58] sm:$0xff] %vm433_vm0, %v940_v13  ;;  %v1110_v16 = vadd.s32 16, %v388_v6  ;;  %v411_v17 = vand.u32 255, %v407_v7  ;;  %v448_v18 = vand.u32 255, %v714_v8  ;;  %v449_v19 = vand.u32 255, %v445_v9  ;;  %s698_s7 = sld [smem:[#allocation6 + $0x2]] }
  0x65   : > { %v413_v20 = vcvt.s32.f32 %v409_v11  ;;  %v414_v21 = vcvt.s32.f32 %v410_v12  ;;  %v451_v22 = vcvt.s32.f32 %v447_v14  ;;  %v485_v23 = vand.u32 255, %v717_v15  ;;  %s699_s8 = sld [smem:[#allocation7 + $0x2]]  ;;  %s725_s10 = smul.u32 1536, %s922_s15 }
  0x66   : > { %v418_v24 = vstv %s1091_s2  ;;  %vm399_vm1 = vcmp.lt.s32.totalorder %v1110_v16, 20  ;;  %v415_v25 = vcvt.s32.f32 %v411_v17  ;;  %v452_v26 = vcvt.s32.f32 %v448_v18  ;;  %s543_s11 = sshll.u32 %s1099_s29, 4  ;;  %s528_s15 = scalar_lea.sflag [#allocation4], %s1071_s4  ;;  %s1179_s11 = int_to_ptr.vmem [resolvable:$true] %s543_s11 }
  0x67   : > { %v419_v27 = vmul.f32 %v418_v24, %v413_v20  ;;  %v424_v28 = vstv %s1093_s25  ;;  %v420_v29 = vmul.f32 %v418_v24, %v414_v21  ;;  %v453_v30 = vcvt.s32.f32 %v449_v19  ;;  %s1175_s19 = scalar_lea.hbm %s1235_s3, %s725_s10  ;;  %s842_s21 = scalar_lea.vmem %s1179_s11, 1536 }
  0x68   : > { %v421_v31 = vmul.f32 %v418_v24, %v415_v25  ;;  %v456_v32 = vstv %s1096_s23  ;;  %v489_v33 = vcvt.s32.f32 %v485_v23  ;;  %v486_v47 = vand.u32 255, %v718_v34  ;;  %p843_p0 = scmp.ne.s32.totalorder %s1179_s11, %s842_s21  ;;  %p1256_p2 = scmp.ne.s32.totalorder %s1246_s26, 0 }
  0x69   : > { %v425_v35 = vadd.f32 %v424_v28, %v419_v27  ;;  %v426_v36 = vadd.f32 %v424_v28, %v420_v29  ;;  %v457_v37 = vmul.f32 %v456_v32, %v451_v22  ;;  %v462_v38 = vstv %s689_s30  ;;  %s941_s24 = smov [#allocation9]  }
  0x6a   : > { %v427_v40 = vadd.f32 %v424_v28, %v421_v31  ;;  %v458_v41 = vmul.f32 %v456_v32, %v452_v26  ;;  %v459_v42 = vmul.f32 %v456_v32, %v453_v30  ;;  %v494_v43 = vstv %s698_s7  ;;  %p844_p6 = pnand %p843_p0, %p1256_p2  ;;  %s846_s5 = sshll.u32 %s941_s24, 4  ;;  %s847_s5 = int_to_ptr.vmem [resolvable:$false] %s846_s5 }
  0x6b   : > { %434 = vst.msk [vmem:[%s1099_s29] sm:$0xff] %vm433_vm0, %v425_v35  ;;  %435 = vst.msk [vmem:[%s1099_s29 + $0x8] sm:$0xff] %vm433_vm0, %v426_v36  ;;  %v463_v44 = vadd.f32 %v462_v38, %v457_v37  ;;  %v495_v45 = vmul.f32 %v494_v43, %v489_v33  ;;  %v500_v46 = vstv %s699_s8  ;;  %v483_v51 = vunpack.c.0.s8 %v696_v39  ;;  %s848_s6 = scalar_lea.vmem %s847_s5, 3072  ;;  %p849_p12 = scmp.lt.s32.totalorder %s1179_s11, %s847_s5 }
  0x6c   : > { %v431_v48 = vsel %vm399_vm1, %v427_v40, 0.0  ;;  %v464_v49 = vadd.f32 %v462_v38, %v458_v41  ;;  %v465_v50 = vadd.f32 %v462_v38, %v459_v42  ;;  %v490_v53 = vcvt.s32.f32 %v486_v47  ;;  %p845_p10 = pneg %p844_p6  ;;  %p850_p13 = scmp.lt.s32.totalorder %s848_s6, %s842_s21 }
  0x6d   : > { %436 = vst.msk [vmem:[%s1099_s29 + $0x10] sm:$0xff] %vm433_vm0, %v431_v48  ;;  %690 = vst.msk [vmem:[%s1099_s29 + $0x20] sm:$0xff] %vm433_vm0, %v463_v44  ;;  %v501_v52 = vadd.f32 %v500_v46, %v495_v45  ;;  %vm514_vm2 = vcmask 261312   ;;  %v487_v55 = vand.u32 255, %v483_v51 }
  0x6e   : > { %691 = vst.msk [vmem:[%s1099_s29 + $0x28] sm:$0xff] %vm433_vm0, %v464_v49  ;;  %v469_v54 = vsel %vm399_vm1, %v465_v50, 0.0  ;;  %v496_v56 = vmul.f32 %v494_v43, %v490_v53  ;;  %p851_p1 = por %p850_p13, %p849_p12 }
  0x6f   : > { %515 = vst.msk [vmem:[%s1099_s29] sm:$0xff] %vm514_vm2, %v940_v13  ;;  %516 = vst.msk [vmem:[%s1099_s29 + $0x8] sm:$0xff] %vm514_vm2, %v940_v13  ;;  %v491_v57 = vcvt.s32.f32 %v487_v55 }
  0x70   : > { %517 = vst.msk [vmem:[%s1099_s29 + $0x10] sm:$0xff] %vm514_vm2, %v940_v13  ;;  %518 = vst.msk [vmem:[%s1099_s29 + $0x18] sm:$0xff] %vm514_vm2, %v940_v13  ;;  %v502_v58 = vadd.f32 %v500_v46, %v496_v56  ;;  %p852_p3 = pnand %p851_p1, %p845_p10 }
  0x71   : > { %519 = vst.msk [vmem:[%s1099_s29 + $0x20] sm:$0xff] %vm514_vm2, %v940_v13  ;;  %522 = vst.msk [vmem:[%s1099_s29 + $0x38] sm:$0xff] %vm514_vm2, %v940_v13  ;;  %v497_v59 = vmul.f32 %v494_v43, %v491_v57 }
  0x72   : > { %526 = vst.msk [vmem:[%s1099_s29 + $0x58] sm:$0xff] %vm514_vm2, %v940_v13  ;;  %520 = vst.msk [vmem:[%s1099_s29 + $0x28] sm:$0xff] %vm514_vm2, %v940_v13 }
  0x73   : > { %692 = vst.msk [vmem:[%s1099_s29 + $0x30] sm:$0xff] %vm433_vm0, %v469_v54  ;;  %700 = vst.msk [vmem:[%s1099_s29 + $0x40] sm:$0xff] %vm433_vm0, %v501_v52  ;;  %v503_v60 = vadd.f32 %v500_v46, %v497_v59 }
  0x74   : > { %521 = vst.msk [vmem:[%s1099_s29 + $0x30] sm:$0xff] %vm514_vm2, %v940_v13  ;;  %523 = vst.msk [vmem:[%s1099_s29 + $0x40] sm:$0xff] %vm514_vm2, %v940_v13 }
  0x75   : > { %701 = vst.msk [vmem:[%s1099_s29 + $0x48] sm:$0xff] %vm433_vm0, %v502_v58  ;;  %v507_v61 = vsel %vm399_vm1, %v503_v60, 0.0 }
  0x76   : > { %524 = vst.msk [vmem:[%s1099_s29 + $0x48] sm:$0xff] %vm514_vm2, %v940_v13 }
  0x77   : > { %702 = vst.msk [vmem:[%s1099_s29 + $0x50] sm:$0xff] %vm433_vm0, %v507_v61 }
  0x78   : > { %525 = vst.msk [vmem:[%s1099_s29 + $0x50] sm:$0xff] %vm514_vm2, %v940_v13 }
  0x79   : > { %855 = shalt.err (!%p852_p3)
}
  0x7a   : > { %s856_s9 = scalar_lea.hbm %s1175_s19, 1536  ;;  %s860_s25 = scalar_lea.hbm %s1235_s3, 3072 }
  0x7b   : > { %p857_p7 = scmp.ne.s32.totalorder %s1175_s19, %s856_s9  ;;  %p861_p5 = scmp.lt.s32.totalorder %s1175_s19, %s1235_s3 }
  0x7c   : > { %p862_p8 = scmp.lt.s32.totalorder %s860_s25, %s856_s9 }
  0x7d   : > { %p858_p11 = pnand %p857_p7, %p1256_p2 }
  0x7e   : > { %p863_p0 = por %p862_p8, %p861_p5 }
  0x7f   : > { %p859_p4 = pneg %p858_p11 }
  0x81   : > { %p864_p6 = pnand %p863_p0, %p859_p4 }
  0x83   : > { %867 = shalt.err (!%p864_p6)
}
  0x84   : > { %s942_s30 = smov 128   ;;  %s943_s7 = smov 8  }
  0x85   : > { %735 = dma.vmem_to_hbm [thread:$0]  (%p1256_p2), %s1179_s11, 1536, %s1175_s19, %s528_s15, %s942_s30, %s942_s30, %s943_s7  }
  0x86 PF: > { %s558_s8 = sand.u32 1, %s910_s12   ;;  %p1257_p10 = scmp.ne.s32.totalorder %s1247_s28, 0 }
  0x87   : > { %s559_s10 = scalar_lea.sflag [#allocation4], %s558_s8 }
  0x88   : > { %p745_p12 = pnand %p657_p9, %p1257_p10 }
  0x8a   : > { %p746_p13 = pneg %p745_p12 }
  0x8c   : > { %905 = dma.done.wait (%p746_p13), %s559_s10, 1536  }
  0x8d   : > { %907 = vsyncadd (%p746_p13), %s559_s10, 4294965760  ;;  %s21_s17 = sadd.s32 1, %s930_s17   ;;  %s1258_s12 = smov %s914_s13 }
  0x8e   : > { %p18_p1 = scmp.ge.s32.totalorder %s21_s17, 4   ;;  %s1259_s13 = smov %s918_s14 }
  0x8f   : > { %s1260_s14 = smov %s1026_s27  ;;  %s1261_s15 = smov %s926_s16 }
  0x90   : > { %s1262_s16 = smov %s1264_s20  ;;  %20 = sbr.rel (!%p18_p1) target bundleno = 11 (0xb), region = 107 }
  0x95   :  { %564 = vsyncpa [#allocation3], 1 }
  0x96   :  { %566 = vsyncpa [#allocation3 + $0x1], 1 }
  0x97   :  { %567 = vsyncpa [#allocation4], 1 }
  0x98   :  { %569 = vsyncpa [#allocation4 + $0x1], 1 }
  0x99   :  { %570 = vsyncpa [#allocation5], 1 }
  0x9a   :  { %572 = vsyncpa [#allocation5 + $0x1], 1 }
  0x9b   :  { %573 = vsyncpa [#allocation8], 1 }

</bundles_post_ra>
